<compile_context>
chip_gen: v7x
topology: tpu7x:2x2x1
jax: 0.10.0
libtpu: 0.0.40
codegen_flags: <defaults>
</compile_context>

<pallas_src>
import functools
from typing import NamedTuple

import numpy as np
import jax
import jax.numpy as jnp
from jax import lax
from jax.experimental import pallas as pl
from jax.experimental.pallas import tpu as pltpu


N_CHAN = 20        # spectral-branch channel count (fixed by the model)
KSIZE = 16         # conv/pool kernel extent along the band/depth axis
STRIDE = 4
LANE = 128


class TwoCnnConfig(NamedTuple):
    band: int
    band_pad: int
    n_classes: int
    c_pad: int


def _round_up(n, m):
    return ((n + m - 1) // m) * m


def _pick_batch_tile(batch):
    """Fill the MXU M dimension (up to 256 rows) but keep >=2 grid steps when the
    batch allows it, so the 'parallel' axis can shard across v7x's two TensorCores."""
    tile = min(256, _round_up(batch, 8))
    if batch >= 16:
        tile = min(tile, _round_up((batch + 1) // 2, 8))
    return max(8, tile)


# ----------------------------------------------------------------------------
# Fused Pallas kernel: whole forward pass for one batch tile (4 dots total)
# ----------------------------------------------------------------------------
def _fused_kernel(x_ref, w_spec_ref, b_spec_ref, w_spat_ref, w3a_ref, w3b_ref,
                  b_out_ref, o_ref):
    f32, bf16 = jnp.float32, jnp.bfloat16
    x = x_ref[...].astype(bf16)                                      # (Bt, band_pad)

    # Spectral trunk: conv11∘conv12 pre-folded into a single dense matrix.
    x12 = jnp.dot(x, w_spec_ref[...], preferred_element_type=f32) + b_spec_ref[...]

    # pool1: MaxPool3d((16,1,1), stride 4) along depth.  D3 = 2 windows (starts 0 & 4)
    # share depths 4..15, so compute that core once; balanced max trees throughout.
    def slot(d):
        return x12[:, d * N_CHAN:(d + 1) * N_CHAN]                   # (Bt, 20)

    def tree_max(depths):
        vals = [slot(d) for d in depths]
        while len(vals) > 1:
            nxt = [jnp.maximum(vals[i], vals[i + 1]) for i in range(0, len(vals) - 1, 2)]
            if len(vals) & 1:
                nxt.append(vals[-1])
            vals = nxt
        return vals[0]

    shared = tree_max(range(STRIDE, KSIZE))                          # depths 4..15
    pool0 = jnp.maximum(shared, tree_max(range(0, STRIDE)))          # depths 0..15
    pool1 = jnp.maximum(shared, tree_max(range(KSIZE, KSIZE + STRIDE)))  # depths 4..19

    # Head: concat([X1, X2]) @ conv31 @ conv32 expressed as three accumulating
    # partial dots (no lane concat).  The spatial branch is fully linear
    # (pool2 == identity on 1x1), so it is folded all the way into w_spat.
    out = jnp.dot(x, w_spat_ref[...], preferred_element_type=f32)
    out = out + jnp.dot(pool0.astype(bf16), w3a_ref[...], preferred_element_type=f32)
    out = out + jnp.dot(pool1.astype(bf16), w3b_ref[...], preferred_element_type=f32)
    o_ref[...] = out + b_out_ref[...]


# ----------------------------------------------------------------------------
# One-time weight preparation: Toeplitz construction + linear-layer folding
# ----------------------------------------------------------------------------
def prepare_params(p):
    f32, bf16 = jnp.float32, jnp.bfloat16
    band = p["w21"].shape[1]
    n_classes = p["w32"].shape[0]
    d1 = (band - KSIZE) // STRIDE + 1
    d2 = (d1 - KSIZE) // STRIDE + 1
    d3 = (d2 - KSIZE) // STRIDE + 1
    assert N_CHAN * d3 == 40, "band must satisfy the view(batch, 40, H, W) constraint"

    # conv11: Conv3d(1, 20, (16,1,1), stride 4) as a banded (band, D1*20) matrix.
    w11 = p["w11"].reshape(N_CHAN, KSIZE).astype(f32)                        # (cout, k)
    k1 = jnp.arange(band)[:, None] - STRIDE * jnp.arange(d1)[None, :]        # (band, D1)
    valid1 = (k1 >= 0) & (k1 < KSIZE)
    w11_band = jnp.where(valid1[..., None],
                         w11.T[jnp.clip(k1, 0, KSIZE - 1)], 0.0)             # (band, D1, 20)
    w11_band = w11_band.reshape(band, d1 * N_CHAN)
    b11_flat = jnp.tile(p["b11"].astype(f32), (d1,))[None, :]

    # conv12: Conv3d(20, 20, (16,1,1), stride 4) as a banded (D1*20, D2*20) matrix.
    w12 = p["w12"].reshape(N_CHAN, N_CHAN, KSIZE).astype(f32)                # (cout, cin, k)
    w12_kic = jnp.transpose(w12, (2, 1, 0))                                  # (k, cin, cout)
    k2 = jnp.arange(d1)[:, None] - STRIDE * jnp.arange(d2)[None, :]          # (D1, D2)
    valid2 = (k2 >= 0) & (k2 < KSIZE)
    w12_band = jnp.where(valid2[:, :, None, None],
                         w12_kic[jnp.clip(k2, 0, KSIZE - 1)], 0.0)           # (D1, D2, cin, cout)
    w12_band = jnp.transpose(w12_band, (0, 2, 1, 3)).reshape(d1 * N_CHAN, d2 * N_CHAN)
    b12_flat = jnp.tile(p["b12"].astype(f32), (d2,))[None, :]

    # Fold conv11∘conv12 (no nonlinearity in between).
    w_spec = w11_band @ w12_band                                             # (band, D2*20)
    b_spec = b11_flat @ w12_band + b12_flat                                  # (1, D2*20)

    # Spatial branch: only the 3x3 center tap contributes on 1x1 zero-padded inputs.
    w21c = p["w21"][:, :, 1, 1].T.astype(f32)                                # (band, 30)
    w22c = p["w22"][:, :, 1, 1].T.astype(f32)                                # (30, 30)
    w_sp = w21c @ w22c                                                       # (band, 30)
    b_sp = p["b21"].astype(f32)[None, :] @ w22c + p["b22"].astype(f32)[None, :]

    # conv31∘conv32 folded.  Rows of w31 are permuted so the kernel's feature order
    # [depth0(20) | depth1(20) | spatial(30)] matches torch's view() interleaving
    # (channel*2 + depth, then spatial).
    w31t = p["w31"].reshape(400, 70).T.astype(f32)                           # (70, 400)
    perm = jnp.concatenate([2 * jnp.arange(N_CHAN),
                            2 * jnp.arange(N_CHAN) + 1,
                            jnp.arange(2 * N_CHAN, 70)])
    w31p = w31t[perm]
    w32t = p["w32"].reshape(n_classes, 400).T.astype(f32)                    # (400, classes)
    w3 = w31p @ w32t                                                         # (70, classes)
    b3 = p["b31"].astype(f32)[None, :] @ w32t + p["b32"].astype(f32)[None, :]

    w3a = w3[:N_CHAN]                                                        # depth window 0
    w3b = w3[N_CHAN:2 * N_CHAN]                                              # depth window 1
    w3sp = w3[2 * N_CHAN:]                                                   # spatial rows

    # Fold the (fully linear) spatial branch all the way into the head.
    w_spat_out = w_sp @ w3sp                                                 # (band, classes)
    b_out = b3 + b_sp @ w3sp                                                 # (1, classes)

    # Pad everything to lane-dense multiples of 128; MXU operands in bf16, biases f32.
    band_pad = _round_up(band, LANE)                                         # 380 -> 384
    spec_pad = _round_up(d2 * N_CHAN, LANE)                                  # 400 -> 512
    c_pad = _round_up(n_classes, LANE)                                       # classes -> 128

    w_spec_p = jnp.zeros((band_pad, spec_pad), f32).at[:band, :d2 * N_CHAN].set(w_spec)
    b_spec_p = jnp.zeros((1, spec_pad), f32).at[:, :d2 * N_CHAN].set(b_spec)
    w_spat_p = jnp.zeros((band_pad, c_pad), f32).at[:band, :n_classes].set(w_spat_out)
    w3a_p = jnp.zeros((N_CHAN, c_pad), f32).at[:, :n_classes].set(w3a)
    w3b_p = jnp.zeros((N_CHAN, c_pad), f32).at[:, :n_classes].set(w3b)
    b_out_p = jnp.zeros((1, c_pad), f32).at[:, :n_classes].set(b_out)

    weights = {
        "w_spec": w_spec_p.astype(bf16), "b_spec": b_spec_p,
        "w_spat": w_spat_p.astype(bf16),
        "w3a": w3a_p.astype(bf16), "w3b": w3b_p.astype(bf16),
        "b_out": b_out_p,
    }
    cfg = TwoCnnConfig(band=band, band_pad=band_pad, n_classes=n_classes, c_pad=c_pad)
    return weights, cfg


# ----------------------------------------------------------------------------
# Forward pass (single fused pallas_call)
# ----------------------------------------------------------------------------
@functools.partial(jax.jit, static_argnums=(2,))
def two_cnn_forward(x, w, cfg: TwoCnnConfig):
    B, band, H, W = x.shape
    assert H == 1 and W == 1, "view(batch, 40, H, W) in the reference forward forces H=W=1"
    assert band == cfg.band

    bt = _pick_batch_tile(B)
    b_pad = _round_up(B, bt)
    xf = x.reshape(B, band).astype(jnp.float32)
    xp = jnp.pad(xf, ((0, b_pad - B), (0, cfg.band_pad - band)))

    spec_pad = w["w_spec"].shape[1]
    const = lambda i: (0, 0)

    out = pl.pallas_call(
        _fused_kernel,
        out_shape=jax.ShapeDtypeStruct((b_pad, cfg.c_pad), jnp.float32),
        grid=(b_pad // bt,),
        in_specs=[
            pl.BlockSpec((bt, cfg.band_pad), lambda i: (i, 0)),
            pl.BlockSpec((cfg.band_pad, spec_pad), const),
            pl.BlockSpec((1, spec_pad), const),
            pl.BlockSpec((cfg.band_pad, cfg.c_pad), const),
            pl.BlockSpec((N_CHAN, cfg.c_pad), const),
            pl.BlockSpec((N_CHAN, cfg.c_pad), const),
            pl.BlockSpec((1, cfg.c_pad), const),
        ],
        out_specs=pl.BlockSpec((bt, cfg.c_pad), lambda i: (i, 0)),
        compiler_params=pltpu.CompilerParams(
            dimension_semantics=("parallel",),
            vmem_limit_bytes=32 * 1024 * 1024),
    )(xp, w["w_spec"], w["b_spec"], w["w_spat"], w["w3a"], w["w3b"], w["b_out"])

    return out[:B, :cfg.n_classes].reshape(B, cfg.n_classes, 1, 1)


# ----------------------------------------------------------------------------
# Pure-JAX reference (independent check, uses lax conv/reduce_window, f32 end-to-end)
# ----------------------------------------------------------------------------
def two_cnn_reference(x, p):
    B, band, H, W = x.shape
    dn3 = ("NCDHW", "OIDHW", "NCDHW")
    dn2 = ("NCHW", "OIHW", "NCHW")
    xs = x[:, None]                                                     # (B,1,band,H,W)
    x11 = lax.conv_general_dilated(xs, p["w11"], (4, 4, 4), "VALID",
                                   dimension_numbers=dn3) + p["b11"][None, :, None, None, None]
    x12 = lax.conv_general_dilated(x11, p["w12"], (4, 4, 4), "VALID",
                                   dimension_numbers=dn3) + p["b12"][None, :, None, None, None]
    x1 = lax.reduce_window(x12, -jnp.inf, lax.max,
                           (1, 1, 16, 1, 1), (1, 1, 4, 4, 4), "VALID")
    x1 = x1.reshape(B, 40, H, W)
    x21 = lax.conv_general_dilated(x, p["w21"], (1, 1), ((1, 1), (1, 1)),
                                   dimension_numbers=dn2) + p["b21"][None, :, None, None]
    x22 = lax.conv_general_dilated(x21, p["w22"], (1, 1), ((1, 1), (1, 1)),
                                   dimension_numbers=dn2) + p["b22"][None, :, None, None]
    x2 = lax.reduce_window(x22, -jnp.inf, lax.max,
                           (1, 1, 3, 3), (1, 1, 1, 1),
                           ((0, 0), (0, 0), (1, 1), (1, 1)))
    xfn = jnp.concatenate([x1, x2], axis=1)
    xfn1 = lax.conv_general_dilated(xfn, p["w31"], (1, 1), "VALID",
                                    dimension_numbers=dn2) + p["b31"][None, :, None, None]
    out = lax.conv_general_dilated(xfn1, p["w32"], (1, 1), "VALID",
                                   dimension_numbers=dn2) + p["b32"][None, :, None, None]
    return out


# ----------------------------------------------------------------------------
# Deterministic parameter init (PyTorch-shaped weights, uniform fan-in scaling)
# ----------------------------------------------------------------------------
def init_params(key, band, n_classes):
    def u(k, shape, fan_in):
        bound = 1.0 / (fan_in ** 0.5)
        return jax.random.uniform(k, shape, jnp.float32, -bound, bound)

    ks = jax.random.split(key, 12)
    return {
        "w11": u(ks[0], (20, 1, 16, 1, 1), 16),        "b11": u(ks[1], (20,), 16),
        "w12": u(ks[2], (20, 20, 16, 1, 1), 20 * 16),  "b12": u(ks[3], (20,), 20 * 16),
        "w21": u(ks[4], (30, band, 3, 3), band * 9),   "b21": u(ks[5], (30,), band * 9),
        "w22": u(ks[6], (30, 30, 3, 3), 30 * 9),       "b22": u(ks[7], (30,), 30 * 9),
        "w31": u(ks[8], (400, 70, 1, 1), 70),          "b31": u(ks[9], (400,), 70),
        "w32": u(ks[10], (n_classes, 400, 1, 1), 400), "b32": u(ks[11], (n_classes,), 400),
    }


if __name__ == "__main__":
    # band=380 is the smallest band for which the original forward's
    # `.view(batch, 40, H, W)` is valid (with H = W = 1).
    B, band, H, W, n_classes = 2, 380, 1, 1, 9

    key = jax.random.PRNGKey(0)
    kx, kp = jax.random.split(key)
    x = jax.random.normal(kx, (B, band, H, W), jnp.float32)
    params = init_params(kp, band, n_classes)

    weights, cfg = prepare_params(params)     # one-time weight prep, hoisted out of forward
    out = two_cnn_forward(x, weights, cfg)
    out = jax.block_until_ready(out)

    ref = two_cnn_reference(x, params)
    assert out.shape == (B, n_classes, 1, 1), out.shape
    # bf16 MXU operands (f32 accumulation) -> looser tolerance than the pure-f32 version.
    np.testing.assert_allclose(np.asarray(out), np.asarray(ref), rtol=3e-2, atol=3e-2)

    print("KERNEL_OK")
</pallas_src>

<mosaic_0001>
module attributes {stable_mosaic.version = 11 : i64} {
  func.func @_fused_kernel(%arg0: i32, %arg1: memref<8x384xf32, #tpu.memory_space<vmem>>, %arg2: memref<384x512xbf16, #tpu.memory_space<vmem>>, %arg3: memref<1x512xf32, #tpu.memory_space<vmem>>, %arg4: memref<384x128xbf16, #tpu.memory_space<vmem>>, %arg5: memref<20x128xbf16, #tpu.memory_space<vmem>>, %arg6: memref<20x128xbf16, #tpu.memory_space<vmem>>, %arg7: memref<1x128xf32, #tpu.memory_space<vmem>>, %arg8: memref<8x128xf32, #tpu.memory_space<vmem>>) attributes {dimension_semantics = [#tpu.dimension_semantics<parallel>], iteration_bounds = array<i64: 1>, scalar_prefetch = 0 : i64, scratch_operands = 0 : i64, tpu.core_type = #tpu.core_type<tc>, window_params = [{transform_indices = @transform_0, window_bounds = array<i64: 8, 384>}, {pipeline_mode = #tpu.pipeline_mode<synchronous>, transform_indices = @transform_1, window_bounds = array<i64: 384, 512>}, {pipeline_mode = #tpu.pipeline_mode<synchronous>, transform_indices = @transform_2, window_bounds = array<i64: 1, 512>}, {pipeline_mode = #tpu.pipeline_mode<synchronous>, transform_indices = @transform_3, window_bounds = array<i64: 384, 128>}, {pipeline_mode = #tpu.pipeline_mode<synchronous>, transform_indices = @transform_4, window_bounds = array<i64: 20, 128>}, {pipeline_mode = #tpu.pipeline_mode<synchronous>, transform_indices = @transform_5, window_bounds = array<i64: 20, 128>}, {pipeline_mode = #tpu.pipeline_mode<synchronous>, transform_indices = @transform_6, window_bounds = array<i64: 1, 128>}, {transform_indices = @transform_7, window_bounds = array<i64: 8, 128>}]} {
    %c0 = arith.constant 0 : index
    %c0_0 = arith.constant 0 : index
    %0 = vector.load %arg1[%c0, %c0_0] : memref<8x384xf32, #tpu.memory_space<vmem>>, vector<8x384xf32>
    %1 = arith.truncf %0 : vector<8x384xf32> to vector<8x384xbf16>
    %c0_1 = arith.constant 0 : index
    %c0_2 = arith.constant 0 : index
    %2 = vector.load %arg2[%c0_1, %c0_2] : memref<384x512xbf16, #tpu.memory_space<vmem>>, vector<384x512xbf16>
    %cst = arith.constant dense<0.000000e+00> : vector<8x512xf32>
    %3 = tpu.matmul %1, %2, %cst {dimension_numbers = #tpu.dot_dimension_numbers<[1], [0], [0], [1], [0, 0, 1, 1], [], []>} : vector<8x384xbf16>, vector<384x512xbf16>, vector<8x512xf32> -> vector<8x512xf32>
    %c0_3 = arith.constant 0 : index
    %c0_4 = arith.constant 0 : index
    %4 = vector.load %arg3[%c0_3, %c0_4] : memref<1x512xf32, #tpu.memory_space<vmem>>, vector<1x512xf32>
    %5 = vector.broadcast %4 : vector<1x512xf32> to vector<8x512xf32>
    %6 = arith.addf %3, %5 : vector<8x512xf32>
    %7 = vector.extract_strided_slice %6 {offsets = [0, 80], sizes = [8, 20], strides = [1, 1]} : vector<8x512xf32> to vector<8x20xf32>
    %8 = vector.extract_strided_slice %6 {offsets = [0, 100], sizes = [8, 20], strides = [1, 1]} : vector<8x512xf32> to vector<8x20xf32>
    %9 = vector.extract_strided_slice %6 {offsets = [0, 120], sizes = [8, 20], strides = [1, 1]} : vector<8x512xf32> to vector<8x20xf32>
    %10 = vector.extract_strided_slice %6 {offsets = [0, 140], sizes = [8, 20], strides = [1, 1]} : vector<8x512xf32> to vector<8x20xf32>
    %11 = vector.extract_strided_slice %6 {offsets = [0, 160], sizes = [8, 20], strides = [1, 1]} : vector<8x512xf32> to vector<8x20xf32>
    %12 = vector.extract_strided_slice %6 {offsets = [0, 180], sizes = [8, 20], strides = [1, 1]} : vector<8x512xf32> to vector<8x20xf32>
    %13 = vector.extract_strided_slice %6 {offsets = [0, 200], sizes = [8, 20], strides = [1, 1]} : vector<8x512xf32> to vector<8x20xf32>
    %14 = vector.extract_strided_slice %6 {offsets = [0, 220], sizes = [8, 20], strides = [1, 1]} : vector<8x512xf32> to vector<8x20xf32>
    %15 = vector.extract_strided_slice %6 {offsets = [0, 240], sizes = [8, 20], strides = [1, 1]} : vector<8x512xf32> to vector<8x20xf32>
    %16 = vector.extract_strided_slice %6 {offsets = [0, 260], sizes = [8, 20], strides = [1, 1]} : vector<8x512xf32> to vector<8x20xf32>
    %17 = vector.extract_strided_slice %6 {offsets = [0, 280], sizes = [8, 20], strides = [1, 1]} : vector<8x512xf32> to vector<8x20xf32>
    %18 = vector.extract_strided_slice %6 {offsets = [0, 300], sizes = [8, 20], strides = [1, 1]} : vector<8x512xf32> to vector<8x20xf32>
    %19 = arith.maximumf %7, %8 : vector<8x20xf32>
    %20 = arith.maximumf %9, %10 : vector<8x20xf32>
    %21 = arith.maximumf %11, %12 : vector<8x20xf32>
    %22 = arith.maximumf %13, %14 : vector<8x20xf32>
    %23 = arith.maximumf %15, %16 : vector<8x20xf32>
    %24 = arith.maximumf %17, %18 : vector<8x20xf32>
    %25 = arith.maximumf %19, %20 : vector<8x20xf32>
    %26 = arith.maximumf %21, %22 : vector<8x20xf32>
    %27 = arith.maximumf %23, %24 : vector<8x20xf32>
    %28 = arith.maximumf %25, %26 : vector<8x20xf32>
    %29 = arith.maximumf %28, %27 : vector<8x20xf32>
    %30 = vector.extract_strided_slice %6 {offsets = [0, 0], sizes = [8, 20], strides = [1, 1]} : vector<8x512xf32> to vector<8x20xf32>
    %31 = vector.extract_strided_slice %6 {offsets = [0, 20], sizes = [8, 20], strides = [1, 1]} : vector<8x512xf32> to vector<8x20xf32>
    %32 = vector.extract_strided_slice %6 {offsets = [0, 40], sizes = [8, 20], strides = [1, 1]} : vector<8x512xf32> to vector<8x20xf32>
    %33 = vector.extract_strided_slice %6 {offsets = [0, 60], sizes = [8, 20], strides = [1, 1]} : vector<8x512xf32> to vector<8x20xf32>
    %34 = arith.maximumf %30, %31 : vector<8x20xf32>
    %35 = arith.maximumf %32, %33 : vector<8x20xf32>
    %36 = arith.maximumf %34, %35 : vector<8x20xf32>
    %37 = arith.maximumf %29, %36 : vector<8x20xf32>
    %38 = vector.extract_strided_slice %6 {offsets = [0, 320], sizes = [8, 20], strides = [1, 1]} : vector<8x512xf32> to vector<8x20xf32>
    %39 = vector.extract_strided_slice %6 {offsets = [0, 340], sizes = [8, 20], strides = [1, 1]} : vector<8x512xf32> to vector<8x20xf32>
    %40 = vector.extract_strided_slice %6 {offsets = [0, 360], sizes = [8, 20], strides = [1, 1]} : vector<8x512xf32> to vector<8x20xf32>
    %41 = vector.extract_strided_slice %6 {offsets = [0, 380], sizes = [8, 20], strides = [1, 1]} : vector<8x512xf32> to vector<8x20xf32>
    %42 = arith.maximumf %38, %39 : vector<8x20xf32>
    %43 = arith.maximumf %40, %41 : vector<8x20xf32>
    %44 = arith.maximumf %42, %43 : vector<8x20xf32>
    %45 = arith.maximumf %29, %44 : vector<8x20xf32>
    %c0_5 = arith.constant 0 : index
    %c0_6 = arith.constant 0 : index
    %46 = vector.load %arg4[%c0_5, %c0_6] : memref<384x128xbf16, #tpu.memory_space<vmem>>, vector<384x128xbf16>
    %cst_7 = arith.constant dense<0.000000e+00> : vector<8x128xf32>
    %47 = tpu.matmul %1, %46, %cst_7 {dimension_numbers = #tpu.dot_dimension_numbers<[1], [0], [0], [1], [0, 0, 1, 1], [], []>} : vector<8x384xbf16>, vector<384x128xbf16>, vector<8x128xf32> -> vector<8x128xf32>
    %48 = arith.truncf %37 : vector<8x20xf32> to vector<8x20xbf16>
    %c0_8 = arith.constant 0 : index
    %c0_9 = arith.constant 0 : index
    %49 = vector.load %arg5[%c0_8, %c0_9] : memref<20x128xbf16, #tpu.memory_space<vmem>>, vector<20x128xbf16>
    %cst_10 = arith.constant dense<0.000000e+00> : vector<8x128xf32>
    %50 = tpu.matmul %48, %49, %cst_10 {dimension_numbers = #tpu.dot_dimension_numbers<[1], [0], [0], [1], [0, 0, 1, 1], [], []>} : vector<8x20xbf16>, vector<20x128xbf16>, vector<8x128xf32> -> vector<8x128xf32>
    %51 = arith.addf %47, %50 : vector<8x128xf32>
    %52 = arith.truncf %45 : vector<8x20xf32> to vector<8x20xbf16>
    %c0_11 = arith.constant 0 : index
    %c0_12 = arith.constant 0 : index
    %53 = vector.load %arg6[%c0_11, %c0_12] : memref<20x128xbf16, #tpu.memory_space<vmem>>, vector<20x128xbf16>
    %cst_13 = arith.constant dense<0.000000e+00> : vector<8x128xf32>
    %54 = tpu.matmul %52, %53, %cst_13 {dimension_numbers = #tpu.dot_dimension_numbers<[1], [0], [0], [1], [0, 0, 1, 1], [], []>} : vector<8x20xbf16>, vector<20x128xbf16>, vector<8x128xf32> -> vector<8x128xf32>
    %55 = arith.addf %51, %54 : vector<8x128xf32>
    %c0_14 = arith.constant 0 : index
    %c0_15 = arith.constant 0 : index
    %56 = vector.load %arg7[%c0_14, %c0_15] : memref<1x128xf32, #tpu.memory_space<vmem>>, vector<1x128xf32>
    %57 = vector.broadcast %56 : vector<1x128xf32> to vector<8x128xf32>
    %58 = arith.addf %55, %57 : vector<8x128xf32>
    %c0_16 = arith.constant 0 : index
    %c0_17 = arith.constant 0 : index
    %59 = vector.load %arg8[%c0_16, %c0_17] : memref<8x128xf32, #tpu.memory_space<vmem>>, vector<8x128xf32>
    tpu.vector_store %arg8[%c0_16, %c0_17], %58 {strides = array<i32>} : memref<8x128xf32, #tpu.memory_space<vmem>>, vector<8x128xf32>,
    return
  }
  func.func @transform_0(%arg0: i32) -> (i32, i32) {
    %c0_i32 = arith.constant 0 : i32
    %c0_i32_0 = arith.constant 0 : i32
    return %arg0, %c0_i32 : i32, i32
  }
  func.func @transform_1(%arg0: i32) -> (i32, i32) {
    %c0_i32 = arith.constant 0 : i32
    %c0_i32_0 = arith.constant 0 : i32
    %c0_i32_1 = arith.constant 0 : i32
    return %c0_i32, %c0_i32_0 : i32, i32
  }
  func.func @transform_2(%arg0: i32) -> (i32, i32) {
    %c0_i32 = arith.constant 0 : i32
    %c0_i32_0 = arith.constant 0 : i32
    %c0_i32_1 = arith.constant 0 : i32
    return %c0_i32, %c0_i32_0 : i32, i32
  }
  func.func @transform_3(%arg0: i32) -> (i32, i32) {
    %c0_i32 = arith.constant 0 : i32
    %c0_i32_0 = arith.constant 0 : i32
    %c0_i32_1 = arith.constant 0 : i32
    return %c0_i32, %c0_i32_0 : i32, i32
  }
  func.func @transform_4(%arg0: i32) -> (i32, i32) {
    %c0_i32 = arith.constant 0 : i32
    %c0_i32_0 = arith.constant 0 : i32
    %c0_i32_1 = arith.constant 0 : i32
    return %c0_i32, %c0_i32_0 : i32, i32
  }
  func.func @transform_5(%arg0: i32) -> (i32, i32) {
    %c0_i32 = arith.constant 0 : i32
    %c0_i32_0 = arith.constant 0 : i32
    %c0_i32_1 = arith.constant 0 : i32
    return %c0_i32, %c0_i32_0 : i32, i32
  }
  func.func @transform_6(%arg0: i32) -> (i32, i32) {
    %c0_i32 = arith.constant 0 : i32
    %c0_i32_0 = arith.constant 0 : i32
    %c0_i32_1 = arith.constant 0 : i32
    return %c0_i32, %c0_i32_0 : i32, i32
  }
  func.func @transform_7(%arg0: i32) -> (i32, i32) {
    %c0_i32 = arith.constant 0 : i32
    %c0_i32_0 = arith.constant 0 : i32
    return %arg0, %c0_i32 : i32, i32
  }
}

</mosaic_0001>

<bundles_post_ra>
// kernel: two_cnn_forward.1
= control target key start
LH: loop header
LB: loop body
LE: loop exit
PB: predicated region body
PF: predicated region fallthrough
CT: control target
= control target key end

     0   :  { %12 = vsyncpa [#allocation3], 0  ;;  %s1936_s0 = inlined_call_operand.vmem [shape: f32[8,384], index: 0, kind: input, shape index: {}]   ;;  %s1937_s1 = inlined_call_operand.hbm [shape: bf16[384,512], index: 1, kind: input, shape index: {}]   ;;  %s1938_s2 = inlined_call_operand.vmem [shape: f32[1,512], index: 2, kind: input, shape index: {}]   ;;  %s1939_s3 = inlined_call_operand.hbm [shape: bf16[384,128], index: 3, kind: input, shape index: {}]   ;;  %s1940_s4 = inlined_call_operand.vmem [shape: bf16[20,128], index: 4, kind: input, shape index: {}]   ;;  %s1941_s5 = inlined_call_operand.vmem [shape: bf16[20,128], index: 5, kind: input, shape index: {}]   ;;  %s1942_s6 = inlined_call_operand.vmem [shape: f32[1,128], index: 6, kind: input, shape index: {}]   ;;  %s1943_s7 = inlined_call_operand.vmem [shape: f32[8,128], index: 7, kind: output, shape index: {}]  }
   0x1   :  { %13 = vsyncpa [#allocation5], 0  ;;  %s1775_s24 = smov [#allocation2]   ;;  %s1727_s28 = scalar_lea.hbm %s1937_s1, 12288 }
   0x2   :  { %s21_s25 = sshll.u32 %s1775_s24, 4  ;;  %p1728_p0 = scmp.ne.s32.totalorder %s1937_s1, %s1727_s28  ;;  %s22_s25 = int_to_ptr.vmem [resolvable:$true] %s21_s25 }
   0x3   :  { %p1731_p1 = scmp.lt.u32.totalorder %s1727_s28, %s1937_s1 }
   0x5   :  { %p1733_p2 = pnand %p1731_p1, %p1728_p0 }
   0x7   :  { %1736 = shalt.err (!%p1733_p2)
}
   0x8   :  { %s1737_s10 = scalar_lea.vmem %s22_s25, 12288  ;;  %p1742_p4 = scmp.lt.s32.totalorder %s22_s25, %s22_s25 }
   0x9   :  { %p1738_p3 = scmp.ne.s32.totalorder %s22_s25, %s1737_s10  ;;  %p1743_p5 = scmp.lt.s32.totalorder %s1737_s10, %s1737_s10 }
   0xb   :  { %p1744_p6 = por %p1743_p5, %p1742_p4 }
   0xd   :  { %p1745_p7 = pnand %p1744_p6, %p1738_p3 }
   0xf   :  { %1748 = shalt.err (!%p1745_p7)
}
  0x10   :  { %s1776_s11 = smov 256   ;;  %s1777_s12 = smov 16  }
  0x11   :  { %27 = dma.hbm_to_vmem [thread:$0]  %s1937_s1, 12288, %s22_s25, [#allocation3], %s1776_s11, %s1776_s11, %s1777_s12  }
  0x12   :  { %s1778_s15 = smov [#allocation4]   ;;  %s1749_s19 = scalar_lea.hbm %s1939_s3, 3072 }
  0x13   :  { %s35_s16 = sshll.u32 %s1778_s15, 4  ;;  %p1750_p8 = scmp.ne.s32.totalorder %s1939_s3, %s1749_s19  ;;  %s36_s16 = int_to_ptr.vmem [resolvable:$true] %s35_s16 }
  0x14   :  { %p1753_p9 = scmp.lt.u32.totalorder %s1749_s19, %s1939_s3 }
  0x16   :  { %p1755_p10 = pnand %p1753_p9, %p1750_p8 }
  0x18   :  { %1758 = shalt.err (!%p1755_p10)
}
  0x19   :  { %s1759_s24 = scalar_lea.vmem %s36_s16, 3072  ;;  %p1764_p12 = scmp.lt.s32.totalorder %s36_s16, %s36_s16 }
  0x1a   :  { %p1760_p11 = scmp.ne.s32.totalorder %s36_s16, %s1759_s24  ;;  %p1765_p13 = scmp.lt.s32.totalorder %s1759_s24, %s1759_s24 }
  0x1c   :  { %p1766_p0 = por %p1765_p13, %p1764_p12 }
  0x1e   :  { %p1767_p1 = pnand %p1766_p0, %p1760_p11 }
  0x20   :  { %1770 = shalt.err (!%p1767_p1)
}
  0x21   :  { %s1779_s1 = smov 64   ;;  %s1780_s25 = smov 4  }
  0x22   :  { %41 = dma.hbm_to_vmem [thread:$0]  %s1939_s3, 3072, %s36_s16, [#allocation5], %s1779_s1, %s1779_s1, %s1780_s25  }
  0x23   :  { %1771 = dma.done.wait [#allocation3], 12288  }
  0x24   :  { %1772 = vsyncadd [#allocation3], 4294955008 }
  0x25   :  { %1773 = dma.done.wait [#allocation5], 3072  }
  0x26   :  { %1774 = vsyncadd [#allocation5], 4294964224  ;;  %v1555_v0 = vld [vmem:[#allocation2 + $0x4] ss:$16 sps:$4 sm:$0xff]   ;;  %v1557_v1 = vld [vmem:[#allocation2 + $0xc] ss:$16 sps:$4 sm:$0xff]  }
  0x27   :  { %659 = vmatprep.subr.bf16.mxu0 %v1555_v0  ;;  %v1559_v2 = vld [vmem:[#allocation2] ss:$16 sps:$4 sm:$0xff]   ;;  %v1560_v3 = vld [vmem:[#allocation2 + $0x8] ss:$16 sps:$4 sm:$0xff]   ;;  %741 = vmatprep.subr.bf16.mxu1 %v1557_v1  ;;  %v1561_v4 = vld [vmem:[#allocation2 + $0x24] ss:$16 sps:$4 sm:$0xff]  }
  0x28   :  { %660 = vmatpush1.bf16.msra.mxu0 %v1559_v2  ;;  %742 = vmatpush1.bf16.msra.mxu1 %v1560_v3  ;;  %v1563_v5 = vld [vmem:[#allocation2 + $0x2c] ss:$16 sps:$4 sm:$0xff]   ;;  %v1565_v6 = vld [vmem:[#allocation2 + $0x20] ss:$16 sps:$4 sm:$0xff]   ;;  %v1566_v7 = vld [vmem:[#allocation2 + $0x28] ss:$16 sps:$4 sm:$0xff]  }
  0x29   :  { %661 = vmatprep.subr.bf16.mxu0 %v1561_v4  ;;  %743 = vmatprep.subr.bf16.mxu1 %v1563_v5  ;;  %v1567_v8 = vld [vmem:[#allocation2 + $0x44] ss:$16 sps:$4 sm:$0xff]   ;;  %v1569_v9 = vld [vmem:[#allocation2 + $0x4c] ss:$16 sps:$4 sm:$0xff]   ;;  %v1571_v10 = vld [vmem:[#allocation2 + $0x40] ss:$16 sps:$4 sm:$0xff]  }
  0x2a   :  { %v1572_v11 = vld [vmem:[#allocation2 + $0x48] ss:$16 sps:$4 sm:$0xff]   ;;  %v1573_v12 = vld [vmem:[#allocation2 + $0x64] ss:$16 sps:$4 sm:$0xff]   ;;  %v1575_v13 = vld [vmem:[#allocation2 + $0x6c] ss:$16 sps:$4 sm:$0xff]  }
  0x2b   :  { %v1577_v14 = vld [vmem:[#allocation2 + $0x60] ss:$16 sps:$4 sm:$0xff]   ;;  %v1578_v15 = vld [vmem:[#allocation2 + $0x68] ss:$16 sps:$4 sm:$0xff]   ;;  %v1579_v16 = vld [vmem:[#allocation2 + $0x84] ss:$16 sps:$4 sm:$0xff]  }
  0x2c   :  { %662 = vmatpush1.bf16.msra.mxu0 %v1565_v6  ;;  %744 = vmatpush1.bf16.msra.mxu1 %v1566_v7  ;;  %v1581_v17 = vld [vmem:[#allocation2 + $0x8c] ss:$16 sps:$4 sm:$0xff]   ;;  %v1583_v18 = vld [vmem:[#allocation2 + $0x80] ss:$16 sps:$4 sm:$0xff]   ;;  %v1584_v19 = vld [vmem:[#allocation2 + $0x88] ss:$16 sps:$4 sm:$0xff]  }
  0x2d   :  { %663 = vmatprep.subr.bf16.mxu0 %v1567_v8  ;;  %745 = vmatprep.subr.bf16.mxu1 %v1569_v9  ;;  %v1585_v20 = vld [vmem:[#allocation2 + $0xa4] ss:$16 sps:$4 sm:$0xff]   ;;  %v1587_v21 = vld [vmem:[#allocation2 + $0xac] ss:$16 sps:$4 sm:$0xff]   ;;  %v1589_v22 = vld [vmem:[#allocation2 + $0xa0] ss:$16 sps:$4 sm:$0xff]  }
  0x2e   :  { %v1590_v23 = vld [vmem:[#allocation2 + $0xa8] ss:$16 sps:$4 sm:$0xff]   ;;  %v1591_v24 = vld [vmem:[#allocation2 + $0xc4] ss:$16 sps:$4 sm:$0xff]   ;;  %v1593_v25 = vld [vmem:[#allocation2 + $0xcc] ss:$16 sps:$4 sm:$0xff]  }
  0x2f   :  { %v1595_v26 = vld [vmem:[#allocation2 + $0xc0] ss:$16 sps:$4 sm:$0xff]   ;;  %v1596_v27 = vld [vmem:[#allocation2 + $0xc8] ss:$16 sps:$4 sm:$0xff]   ;;  %v1597_v28 = vld [vmem:[#allocation2 + $0xe4] ss:$16 sps:$4 sm:$0xff]  }
  0x30   :  { %664 = vmatpush1.bf16.msra.mxu0 %v1571_v10  ;;  %746 = vmatpush1.bf16.msra.mxu1 %v1572_v11  ;;  %v1599_v29 = vld [vmem:[#allocation2 + $0xec] ss:$16 sps:$4 sm:$0xff]   ;;  %v1601_v30 = vld [vmem:[#allocation2 + $0xe0] ss:$16 sps:$4 sm:$0xff]   ;;  %v1602_v31 = vld [vmem:[#allocation2 + $0xe8] ss:$16 sps:$4 sm:$0xff]  }
  0x31   :  { %665 = vmatprep.subr.bf16.mxu0 %v1573_v12  ;;  %747 = vmatprep.subr.bf16.mxu1 %v1575_v13  ;;  %v1603_v32 = vld [vmem:[#allocation2 + $0x104] ss:$16 sps:$4 sm:$0xff]   ;;  %v1605_v33 = vld [vmem:[#allocation2 + $0x10c] ss:$16 sps:$4 sm:$0xff]   ;;  %v1607_v34 = vld [vmem:[#allocation2 + $0x100] ss:$16 sps:$4 sm:$0xff]  }
  0x32   :  { %v1608_v35 = vld [vmem:[#allocation2 + $0x108] ss:$16 sps:$4 sm:$0xff]   ;;  %v1609_v36 = vld [vmem:[#allocation2 + $0x124] ss:$16 sps:$4 sm:$0xff]   ;;  %v1611_v37 = vld [vmem:[#allocation2 + $0x12c] ss:$16 sps:$4 sm:$0xff]  }
  0x33   :  { %v1613_v38 = vld [vmem:[#allocation2 + $0x120] ss:$16 sps:$4 sm:$0xff]   ;;  %v1614_v39 = vld [vmem:[#allocation2 + $0x128] ss:$16 sps:$4 sm:$0xff]   ;;  %v1615_v40 = vld [vmem:[#allocation2 + $0x144] ss:$16 sps:$4 sm:$0xff]  }
  0x34   :  { %666 = vmatpush1.bf16.msra.mxu0 %v1577_v14  ;;  %748 = vmatpush1.bf16.msra.mxu1 %v1578_v15  ;;  %v1617_v41 = vld [vmem:[#allocation2 + $0x14c] ss:$16 sps:$4 sm:$0xff]   ;;  %v1619_v42 = vld [vmem:[#allocation2 + $0x140] ss:$16 sps:$4 sm:$0xff]   ;;  %v1620_v43 = vld [vmem:[#allocation2 + $0x148] ss:$16 sps:$4 sm:$0xff]  }
  0x35   :  { %667 = vmatprep.subr.bf16.mxu0 %v1579_v16  ;;  %749 = vmatprep.subr.bf16.mxu1 %v1581_v17  ;;  %v1621_v44 = vld [vmem:[#allocation2 + $0x164] ss:$16 sps:$4 sm:$0xff]   ;;  %v1623_v45 = vld [vmem:[#allocation2 + $0x16c] ss:$16 sps:$4 sm:$0xff]   ;;  %v1625_v47 = vld [vmem:[#allocation2 + $0x160] ss:$16 sps:$4 sm:$0xff]  }
  0x36   :  { %v56_v46 = vld [vmem:[%s1936_s0 + $0x8] sm:$0xff]  ;;  %v1627_v50 = vld [vmem:[#allocation2 + $0x184] ss:$16 sps:$4 sm:$0xff]   ;;  %v1631_v52 = vld [vmem:[#allocation2 + $0x180] ss:$16 sps:$4 sm:$0xff]   ;;  %v1781_v16 = vmov 0  }
  0x37   :  { %v1857_v48 = vpack.c.bf16 %v56_v46, %v56_v46  ;;  %v1626_v49 = vld [vmem:[#allocation2 + $0x168] ss:$16 sps:$4 sm:$0xff]   ;;  %v1629_v51 = vld [vmem:[#allocation2 + $0x18c] ss:$16 sps:$4 sm:$0xff]   ;;  %v1633_v54 = vld [vmem:[#allocation2 + $0x1a4] ss:$16 sps:$4 sm:$0xff]  }
  0x38   :  { %668 = vmatpush1.bf16.msra.mxu0 %v1583_v18  ;;  %750 = vmatpush1.bf16.msra.mxu1 %v1584_v19  ;;  %v1632_v53 = vld [vmem:[#allocation2 + $0x188] ss:$16 sps:$4 sm:$0xff]   ;;  %v1635_v55 = vld [vmem:[#allocation2 + $0x1ac] ss:$16 sps:$4 sm:$0xff]   ;;  %v1637_v56 = vld [vmem:[#allocation2 + $0x1a0] ss:$16 sps:$4 sm:$0xff]  }
  0x39   :  { %669 = vmatprep.subr.bf16.mxu0 %v1585_v20  ;;  %751 = vmatprep.subr.bf16.mxu1 %v1587_v21  ;;  %v1638_v57 = vld [vmem:[#allocation2 + $0x1a8] ss:$16 sps:$4 sm:$0xff]   ;;  %v1639_v58 = vld [vmem:[#allocation2 + $0x1c4] ss:$16 sps:$4 sm:$0xff]   ;;  %v1641_v59 = vld [vmem:[#allocation2 + $0x1cc] ss:$16 sps:$4 sm:$0xff]  }
  0x3a   :  { %691 = vmatprep.mubr.bf16.mxu0 %v1857_v48  ;;  %773 = vmatprep.mubr.bf16.mxu1 %v1857_v48  ;;  %v1643_v60 = vld [vmem:[#allocation2 + $0x1c0] ss:$16 sps:$4 sm:$0xff]   ;;  %v1644_v61 = vld [vmem:[#allocation2 + $0x1c8] ss:$16 sps:$4 sm:$0xff]   ;;  %v1645_v62 = vld [vmem:[#allocation2 + $0x1e4] ss:$16 sps:$4 sm:$0xff]  }
  0x3b   :  { %v1647_v63 = vld [vmem:[#allocation2 + $0x1ec] ss:$16 sps:$4 sm:$0xff]   ;;  %v1649_v0 = vld [vmem:[#allocation2 + $0x1e0] ss:$16 sps:$4 sm:$0xff]   ;;  %v1650_v1 = vld [vmem:[#allocation2 + $0x1e8] ss:$16 sps:$4 sm:$0xff]  }
  0x3c   :  { %670 = vmatpush1.bf16.msra.mxu0 %v1589_v22  ;;  %752 = vmatpush1.bf16.msra.mxu1 %v1590_v23  ;;  %v55_v2 = vld [vmem:[%s1936_s0] sm:$0xff]  ;;  %v1656_v4 = vld [vmem:[#allocation2 + $0x20c] ss:$16 sps:$4 sm:$0xff]   ;;  %v1654_v7 = vld [vmem:[#allocation2 + $0x208] ss:$16 sps:$4 sm:$0xff]   ;;  %vm886_vm0 = vcmask 883712  }
  0x3d   :  { %671 = vmatprep.subr.bf16.mxu0 %v1591_v24  ;;  %753 = vmatprep.subr.bf16.mxu1 %v1593_v25  ;;  %v1653_v3 = vld [vmem:[#allocation2 + $0x204] ss:$16 sps:$4 sm:$0xff]   ;;  %v1864_v5 = vpack.c.bf16 %v55_v2, %v55_v2  ;;  %v1651_v6 = vld [vmem:[#allocation2 + $0x200] ss:$16 sps:$4 sm:$0xff]   ;;  %v1662_v9 = vld [vmem:[#allocation2 + $0x22c] ss:$16 sps:$4 sm:$0xff]  }
  0x3e   :  { %v1659_v8 = vld [vmem:[#allocation2 + $0x224] ss:$16 sps:$4 sm:$0xff]   ;;  %v1657_v10 = vld [vmem:[#allocation2 + $0x220] ss:$16 sps:$4 sm:$0xff]   ;;  %v1660_v11 = vld [vmem:[#allocation2 + $0x228] ss:$16 sps:$4 sm:$0xff]  }
  0x3f   :  { %v1665_v12 = vld [vmem:[#allocation2 + $0x244] ss:$16 sps:$4 sm:$0xff]   ;;  %v1668_v13 = vld [vmem:[#allocation2 + $0x24c] ss:$16 sps:$4 sm:$0xff]   ;;  %v1663_v14 = vld [vmem:[#allocation2 + $0x240] ss:$16 sps:$4 sm:$0xff]  }
  0x40   :  { %672 = vmatpush1.bf16.msra.mxu0 %v1595_v26  ;;  %754 = vmatpush1.bf16.msra.mxu1 %v1596_v27  ;;  %v1666_v15 = vld [vmem:[#allocation2 + $0x248] ss:$16 sps:$4 sm:$0xff]   ;;  %v1671_v17 = vld [vmem:[#allocation2 + $0x264] ss:$16 sps:$4 sm:$0xff]   ;;  %v1674_v18 = vld [vmem:[#allocation2 + $0x26c] ss:$16 sps:$4 sm:$0xff]  }
  0x41   :  { %673 = vmatprep.subr.bf16.mxu0 %v1597_v28  ;;  %755 = vmatprep.subr.bf16.mxu1 %v1599_v29  ;;  %v1669_v19 = vld [vmem:[#allocation2 + $0x260] ss:$16 sps:$4 sm:$0xff]   ;;  %v1672_v20 = vld [vmem:[#allocation2 + $0x268] ss:$16 sps:$4 sm:$0xff]   ;;  %v1677_v21 = vld [vmem:[#allocation2 + $0x284] ss:$16 sps:$4 sm:$0xff]  }
  0x42   :  { %v1680_v22 = vld [vmem:[#allocation2 + $0x28c] ss:$16 sps:$4 sm:$0xff]   ;;  %v1675_v23 = vld [vmem:[#allocation2 + $0x280] ss:$16 sps:$4 sm:$0xff]   ;;  %v1678_v24 = vld [vmem:[#allocation2 + $0x288] ss:$16 sps:$4 sm:$0xff]  }
  0x43   :  { %v1683_v25 = vld [vmem:[#allocation2 + $0x2a4] ss:$16 sps:$4 sm:$0xff]   ;;  %v1686_v26 = vld [vmem:[#allocation2 + $0x2ac] ss:$16 sps:$4 sm:$0xff]   ;;  %v1681_v27 = vld [vmem:[#allocation2 + $0x2a0] ss:$16 sps:$4 sm:$0xff]  }
  0x44   :  { %674 = vmatpush1.bf16.msra.mxu0 %v1601_v30  ;;  %756 = vmatpush1.bf16.msra.mxu1 %v1602_v31  ;;  %v1684_v28 = vld [vmem:[#allocation2 + $0x2a8] ss:$16 sps:$4 sm:$0xff]   ;;  %v1689_v29 = vld [vmem:[#allocation2 + $0x2c4] ss:$16 sps:$4 sm:$0xff]   ;;  %v1692_v30 = vld [vmem:[#allocation2 + $0x2cc] ss:$16 sps:$4 sm:$0xff]  }
  0x45   :  { %675 = vmatprep.subr.bf16.mxu0 %v1603_v32  ;;  %757 = vmatprep.subr.bf16.mxu1 %v1605_v33  ;;  %v1687_v31 = vld [vmem:[#allocation2 + $0x2c0] ss:$16 sps:$4 sm:$0xff]   ;;  %v1690_v32 = vld [vmem:[#allocation2 + $0x2c8] ss:$16 sps:$4 sm:$0xff]   ;;  %v1695_v33 = vld [vmem:[#allocation2 + $0x2e4] ss:$16 sps:$4 sm:$0xff]  }
  0x46   :  { %s1785_s13 = smov 48   ;;  %vm1786_vm1 = vmmov 0   ;;  %s1787_s14 = smov 96   ;;  %vm968_vm2 = vcmask 1041408   ;;  %vm846_vm3 = vcmask 719872   ;;  %vm869_vm4 = vcmask 785408  }
  0x47   :  { %s1788_s17 = smov 80   ;;  %vm964_vm5 = vcmask 162816  }
  0x48   :  { %676 = vmatpush1.bf16.msra.mxu0 %v1607_v34  ;;  %758 = vmatpush1.bf16.msra.mxu1 %v1608_v35  ;;  %v1698_v34 = vld [vmem:[#allocation2 + $0x2ec] ss:$16 sps:$4 sm:$0xff]   ;;  %v1693_v35 = vld [vmem:[#allocation2 + $0x2e0] ss:$16 sps:$4 sm:$0xff]  }
  0x49   :  { %677 = vmatprep.subr.bf16.mxu0 %v1609_v36  ;;  %759 = vmatprep.subr.bf16.mxu1 %v1611_v37  ;;  %v1696_v36 = vld [vmem:[#allocation2 + $0x2e8] ss:$16 sps:$4 sm:$0xff]   ;;  %v57_v37 = vld [vmem:[%s1936_s0 + $0x10] sm:$0xff]  ;;  %s1782_s0 = smov 108  }
  0x4c   :  { %678 = vmatpush1.bf16.msra.mxu0 %v1613_v38  ;;  %760 = vmatpush1.bf16.msra.mxu1 %v1614_v39  ;;  %v1871_v38 = vpack.c.bf16 %v57_v37, %v57_v37  ;;  %v159_v39 = vlaneseq  ;;  %v1708_v37 = vld [vmem:[#allocation4 + $0x20] sm:$0xff]  }
  0x4d   :  { %679 = vmatprep.subr.bf16.mxu0 %v1615_v40  ;;  %761 = vmatprep.subr.bf16.mxu1 %v1617_v41 }
  0x4e   :  { %v160_v40 = vshrl.u32 %v159_v39, 7  ;;  %v1709_v39 = vld [vmem:[#allocation4 + $0x68] sm:$0xff]  }
  0x50   :  { %680 = vmatpush1.bf16.msra.mxu0 %v1619_v42  ;;  %762 = vmatpush1.bf16.msra.mxu1 %v1620_v43  ;;  %v169_v41 = vsub.s32 2, %v160_v40  ;;  %v157_v42 = vld [vmem:[%s1938_s2] sm:$0xf]  ;;  %v165_v43 = vsub.s32 1, %v160_v40  ;;  %s1783_s2 = smov 88  }
  0x51   :  { %681 = vmatprep.subr.bf16.mxu0 %v1621_v44  ;;  %763 = vmatprep.subr.bf16.mxu1 %v1623_v45  ;;  %v173_v44 = vsub.s32 3, %v160_v40 }
  0x52   :  { %v170_v45 = vrot.slane %v157_v42, %v169_v41  ;;  %v166_v46 = vrot.slane %v157_v42, %v165_v43  ;;  %v1711_v41 = vld [vmem:[#allocation4 + $0x70] sm:$0xff]   ;;  %v1713_v43 = vld [vmem:[#allocation4 + $0x78] sm:$0xff]  }
  0x54   :  { %682 = vmatpush1.bf16.msra.mxu0 %v1625_v47  ;;  %764 = vmatpush1.bf16.msra.mxu1 %v1626_v49  ;;  %v174_v47 = vrot.slane %v157_v42, %v173_v44  ;;  %v161_v49 = vsub.s32 0, %v160_v40  ;;  %v1710_v40 = vld [vmem:[#allocation4 + $0x28] sm:$0xff]   ;;  %v1714_v44 = vld [vmem:[#allocation4 + $0x38] sm:$0xff]  }
  0x55   :  { %683 = vmatprep.subr.bf16.mxu0 %v1627_v50  ;;  %765 = vmatprep.subr.bf16.mxu1 %v1629_v51 }
  0x58   :  { %684 = vmatpush1.bf16.msra.mxu0 %v1631_v52  ;;  %766 = vmatpush1.bf16.msra.mxu1 %v1632_v53 }
  0x59   :  { %685 = vmatprep.subr.bf16.mxu0 %v1633_v54  ;;  %767 = vmatprep.subr.bf16.mxu1 %v1635_v55 }
  0x5c   :  { %686 = vmatpush1.bf16.msra.mxu0 %v1637_v56  ;;  %768 = vmatpush1.bf16.msra.mxu1 %v1638_v57 }
  0x5d   :  { %687 = vmatprep.subr.bf16.mxu0 %v1639_v58  ;;  %769 = vmatprep.subr.bf16.mxu1 %v1641_v59 }
  0x60   :  { %688 = vmatpush1.bf16.msra.mxu0 %v1643_v60  ;;  %770 = vmatpush1.bf16.msra.mxu1 %v1644_v61  ;;  %v162_v60 = vrot.slane %v157_v42, %v161_v49  ;;  %v1712_v42 = vld [vmem:[#allocation4 + $0x30] sm:$0xff]  }
  0x61   :  { %689 = vmatprep.subr.bf16.mxu0 %v1645_v62  ;;  %771 = vmatprep.subr.bf16.mxu1 %v1647_v63 }
  0x64   :  { %690 = vmatpush1.bf16.msra.mxu0 %v1649_v0  ;;  %772 = vmatpush1.bf16.msra.mxu1 %v1650_v1 }
  0x65   :  { %700 = vmatprep.subr.bf16.mxu0 %v1653_v3  ;;  %782 = vmatprep.subr.bf16.mxu1 %v1656_v4 }
  0x67   :  { %692 = vmatmul.mubr.bf16.vlgmr.msra.gmra.mrb[0].mxu0 %v1864_v5  ;;  %774 = vmatmul.mubr.bf16.vlgmr.msra.gmra.mrb[0].mxu1 %v1864_v5 }
  0x68   :  { %701 = vmatpush1.bf16.msra.mxu0 %v1651_v6  ;;  %783 = vmatpush1.bf16.msra.mxu1 %v1654_v7 }
  0x69   :  { %702 = vmatprep.subr.bf16.mxu0 %v1659_v8  ;;  %784 = vmatprep.subr.bf16.mxu1 %v1662_v9 }
  0x6a   :  { %732 = vmatprep.mubr.bf16.mxu0 %v1781_v16  ;;  %814 = vmatprep.mubr.bf16.mxu1 %v1781_v16 }
  0x6c   :  { %703 = vmatpush1.bf16.msra.mxu0 %v1657_v10  ;;  %785 = vmatpush1.bf16.msra.mxu1 %v1660_v11 }
  0x6d   :  { %704 = vmatprep.subr.bf16.mxu0 %v1665_v12  ;;  %786 = vmatprep.subr.bf16.mxu1 %v1668_v13 }
  0x70   :  { %705 = vmatpush1.bf16.msra.mxu0 %v1663_v14  ;;  %787 = vmatpush1.bf16.msra.mxu1 %v1666_v15 }
  0x71   :  { %706 = vmatprep.subr.bf16.mxu0 %v1671_v17  ;;  %788 = vmatprep.subr.bf16.mxu1 %v1674_v18 }
  0x74   :  { %707 = vmatpush1.bf16.msra.mxu0 %v1669_v19  ;;  %789 = vmatpush1.bf16.msra.mxu1 %v1672_v20  ;;  %v1699_v19 = vld [vmem:[#allocation4 + $0x40] sm:$0xff]  }
  0x75   :  { %708 = vmatprep.subr.bf16.mxu0 %v1677_v21  ;;  %790 = vmatprep.subr.bf16.mxu1 %v1680_v22  ;;  %v1700_v20 = vld [vmem:[#allocation4] sm:$0xff]   ;;  %v1701_v21 = vld [vmem:[#allocation4 + $0x48] sm:$0xff]  }
  0x78   :  { %709 = vmatpush1.bf16.msra.mxu0 %v1675_v23  ;;  %791 = vmatpush1.bf16.msra.mxu1 %v1678_v24  ;;  %v1784_v23 = vmov 0.0  }
  0x79   :  { %710 = vmatprep.subr.bf16.mxu0 %v1683_v25  ;;  %792 = vmatprep.subr.bf16.mxu1 %v1686_v26  ;;  %v1702_v26 = vld [vmem:[#allocation4 + $0x8] sm:$0xff]  }
  0x7c   :  { %711 = vmatpush1.bf16.msra.mxu0 %v1681_v27  ;;  %793 = vmatpush1.bf16.msra.mxu1 %v1684_v28  ;;  %v1703_v28 = vld [vmem:[#allocation4 + $0x50] sm:$0xff]  }
  0x7d   :  { %712 = vmatprep.subr.bf16.mxu0 %v1689_v29  ;;  %794 = vmatprep.subr.bf16.mxu1 %v1692_v30  ;;  %v1715_v29 = vld [vmem:[%s1940_s4] sm:$0xff]  }
  0x80   :  { %713 = vmatpush1.bf16.msra.mxu0 %v1687_v31  ;;  %795 = vmatpush1.bf16.msra.mxu1 %v1690_v32  ;;  %v1717_v31 = vld [vmem:[%s1940_s4 + $0x8] ss:$0 sps:$4 sm:$0x33]   ;;  %v1704_v32 = vld [vmem:[#allocation4 + $0x10] sm:$0xff]  }
  0x81   :  { %714 = vmatprep.subr.bf16.mxu0 %v1695_v33  ;;  %796 = vmatprep.subr.bf16.mxu1 %v1698_v34  ;;  %v1705_v33 = vld [vmem:[#allocation4 + $0x58] sm:$0xff]   ;;  %v970_v34 = vsel %vm968_vm2, %v1717_v31, 0 }
  0x84   :  { %715 = vmatpush1.bf16.msra.mxu0 %v1693_v35  ;;  %797 = vmatpush1.bf16.msra.mxu1 %v1696_v36  ;;  %v1706_v35 = vld [vmem:[#allocation4 + $0x18] sm:$0xff]   ;;  %v1707_v36 = vld [vmem:[#allocation4 + $0x60] sm:$0xff]  }
  0x85   :  { %1478 = vmatprep.subr.bf16.mxu0 %v1784_v23  ;;  %1444 = vmatprep.subr.bf16.mxu1 %v1699_v19 }
  0x87   :  { %733 = vmatmul.mubr.bf16.vlgmr.msra.gmra.mrb[0].mxu0 %v1871_v38  ;;  %815 = vmatmul.mubr.bf16.vlgmr.msra.gmra.mrb[0].mxu1 %v1871_v38 }
  0x88   :  { %1188 = vmatprep.mubr.bf16.mxu1 %v1857_v48  ;;  %1445 = vmatpush3.bf16.msra.mxu1 %v1700_v20 }
  0x89   :  { %1482 = vmatprep.mubr.msk.bf16.mxu0 %vm1786_vm1, %v1784_v23  ;;  %1446 = vmatprep.subr.bf16.mxu1 %v1701_v21 }
  0x8a   :  { %1479 = vmatpush3.bf16.msra.mxu0 %v1715_v29 }
  0x8b   :  { %1480 = vmatprep.subr.bf16.mxu0 %v1784_v23 }
  0x8c   :  { %1447 = vmatpush3.bf16.msra.mxu1 %v1702_v26 }
  0x8d   :  { %1448 = vmatprep.subr.bf16.mxu1 %v1703_v28  ;;  %v1440_v28 = vld [vmem:[%s1942_s6] ss:$0 sm:$0xff] }
  0x8e   :  { %1481 = vmatpush3.bf16.msra.mxu0 %v970_v34 }
  0x8f   :  { %1486 = vmatprep.subr.bf16.mxu0 %v1784_v23 }
  0x90   :  { %1449 = vmatpush3.bf16.msra.mxu1 %v1704_v32 }
  0x91   :  { %1450 = vmatprep.subr.bf16.mxu1 %v1705_v33 }
  0x94   :  { %1451 = vmatpush3.bf16.msra.mxu1 %v1706_v35 }
  0x95   :  { %1452 = vmatprep.subr.bf16.mxu1 %v1707_v36 }
  0x98   :  { %1453 = vmatpush3.bf16.msra.mxu1 %v1708_v37 }
  0x99   :  { %1454 = vmatprep.subr.bf16.mxu1 %v1709_v39 }
  0x9c   :  { %1455 = vmatpush3.bf16.msra.mxu1 %v1710_v40 }
  0x9d   :  { %1456 = vmatprep.subr.bf16.mxu1 %v1711_v41 }
  0xa0   :  { %1457 = vmatpush3.bf16.msra.mxu1 %v1712_v42 }
  0xa1   :  { %1458 = vmatprep.subr.bf16.mxu1 %v1713_v43 }
  0xa4   :  { %1459 = vmatpush3.bf16.msra.mxu1 %v1714_v44 }
  0xa5   :  { %1506 = vmatprep.subr.bf16.mxu1 %v1784_v23 }
  0xa7   :  { %1189 = vmatmul.mubr.bf16.vlgmr.msra.gmra.mrb[4].mxu1 %v1864_v5 }
  0xa8   :  { %1510 = vmatprep.mubr.msk.bf16.mxu1 %vm1786_vm1, %v1784_v23 }
 0x15a   :  { %v734_v50 = vpop.f32.mrb[0].mxu0  ;;  %v816_v51 = vpop.f32.mrb[0].mxu1 }
 0x15b   :  { %v1516_v52 = vadd.f32 %v816_v51, %v170_v45  ;;  %v736_v53 = vpop.f32.mrb[1].mxu0  ;;  %v818_v54 = vpop.f32.mrb[1].mxu1  ;;  %v1514_v62 = vadd.f32 %v734_v50, %v162_v60  ;;  %v1716_v45 = vld [vmem:[%s1941_s5] sm:$0xff]  }
 0x15c   :  { %v1515_v55 = vadd.f32 %v736_v53, %v166_v46  ;;  %v1517_v48 = vadd.f32 %v818_v54, %v174_v47  ;;  %v738_v56 = vpop.f32.mrb[2].mxu0  ;;  %v820_v57 = vpop.f32.mrb[2].mxu1  ;;  %v1718_v46 = vld [vmem:[%s1941_s5 + $0x8] ss:$0 sps:$4 sm:$0x33]   ;;  %1507 = vmatpush3.bf16.msra.mxu1 %v1716_v45 }
 0x15d   :  { %v739_v58 = vpop.f32.mrb[3].mxu0  ;;  %v821_v59 = vpop.f32.mrb[3].mxu1  ;;  %1508 = vmatprep.subr.bf16.mxu1 %v1784_v23  ;;  %v1256_v47 = vsel %vm968_vm2, %v1718_v46, 0 }
 0x15e   :  { %884 = vrot.lane.b32.xlu1 %v1517_v48, %s1782_s0  ;;  %v1540_v61 = vpack.i.bf16 %v1516_v52, %v1515_v55 }
 0x160   :  { %1541 = vrot.lane.b32.xlu0 %v1540_v61, %s1782_s0  ;;  %1509 = vmatpush3.bf16.msra.mxu1 %v1256_v47 }
 0x164   :  { %824 = vrot.lane.b32.xlu0 %v1514_v62, %s1782_s0 }
 0x1d0   :  { %v885_v6 = vpop.permute.xlu1 %884 }
 0x1d2   :  { %v1542_v63 = vpop.permute.xlu0 %1541 }
 0x1d3   :  { %v1544_v0 = vunpack.i.h.bf16 %v1542_v63  ;;  %v1543_v1 = vunpack.i.l.bf16 %v1542_v63  ;;  %v1719_v63 = vld [vmem:[#allocation4 + $0x80] sm:$0xff]  }
 0x1d5   :  { %v839_v2 = vmax.f32 %v1516_v52, %v1544_v0  ;;  %v833_v3 = vmax.f32 %v1515_v55, %v1543_v1  ;;  %v887_v9 = vsel %vm886_vm0, %v1544_v0, %v885_v6  ;;  %v832_v10 = vmax.f32 %v1514_v62, %v1543_v1 }
 0x1d6   :  { %v825_v4 = vpop.permute.xlu0 %824  ;;  %v889_v11 = vmax.f32 %v1516_v52, %v887_v9  ;;  %v838_v13 = vmax.f32 %v1515_v55, %v1544_v0 }
 0x1d7   :  { %v1879_v7 = vmax.f32 %v1514_v62, %v825_v4  ;;  %v1545_v8 = vpack.i.bf16 %v839_v2, %v833_v3 }
 0x1d9   :  { %1546 = vrot.lane.b32.xlu1 %v1545_v8, %s1783_s2  ;;  %874 = vrot.lane.b32.xlu0 %v1879_v7, %s1783_s2  ;;  %v1721_v8 = vld [vmem:[#allocation4 + $0x90] sm:$0xff]  }
 0x1dd   :  { %891 = vrot.lane.b32.xlu1 %v889_v11, %s1783_s2  ;;  %842 = vrot.lane.b32.xlu0 %v832_v10, %s1783_s2  ;;  %v1722_v10 = vld [vmem:[#allocation4 + $0x98] sm:$0xff]   ;;  %v1723_v11 = vld [vmem:[#allocation4 + $0xa0] sm:$0xff]  }
 0x24b   :  { %v1882_v12 = vpop.permute.xlu1 %1546  ;;  %v875_v22 = vpop.permute.xlu0 %874 }
 0x24c   :  { %v1549_v14 = vunpack.i.h.bf16 %v1882_v12  ;;  %v1548_v15 = vunpack.i.l.bf16 %v1882_v12  ;;  %v877_v27 = vmax.f32 %v1879_v7, %v875_v22  ;;  %v1724_v12 = vld [vmem:[#allocation4 + $0xa8] sm:$0xff]  }
 0x24e   :  { %v856_v16 = vmax.f32 %v838_v13, %v1549_v14  ;;  %v857_v17 = vmax.f32 %v839_v2, %v1549_v14  ;;  %v851_v18 = vmax.f32 %v833_v3, %v1548_v15  ;;  %v1460_v3 = vpop.f32.mrb[4].mxu1  ;;  %v1725_v13 = vld [vmem:[#allocation4 + $0xb0] sm:$0xff]   ;;  %v1726_v14 = vld [vmem:[#allocation4 + $0xb8] sm:$0xff]  }
 0x24f   :  { %v892_v25 = vpop.permute.xlu1 %891  ;;  %v843_v49 = vpop.permute.xlu0 %842 }
 0x250   :  { %859 = vrot.lane.b32.xlu1 %v851_v18, %s1785_s13  ;;  %v1550_v24 = vpack.i.bf16 %v857_v17, %v856_v16  ;;  %v894_v30 = vmax.f32 %v839_v2, %v892_v25  ;;  %v847_v50 = vsel %vm846_vm3, %v843_v49, %v1548_v15  ;;  %v1720_v2 = vld [vmem:[#allocation4 + $0x88] sm:$0xff]   ;;  %v1461_v4 = vpop.f32.mrb[5].mxu1 }
 0x251   :  { %v849_v52 = vmax.f32 %v1879_v7, %v847_v50  ;;  %v1462_v6 = vadd.f32 %v1461_v4, %v1460_v3  ;;  %v1463_v7 = vpop.f32.mrb[6].mxu1 }
 0x252   :  { %1551 = vrot.lane.b32.xlu0 %v1550_v24, %s1787_s14  ;;  %v1464_v9 = vpop.f32.mrb[7].mxu1 }
 0x254   :  { %879 = vrot.lane.b32.xlu1 %v877_v27, %s1788_s17 }
 0x256   :  { %896 = vrot.lane.b32.xlu0 %v894_v30, %s1777_s12 }
 0x2c2   :  { %v860_v51 = vpop.permute.xlu1 %859 }
 0x2c3   :  { %v862_v55 = vmax.f32 %v849_v52, %v860_v51 }
 0x2c4   :  { %v1552_v53 = vpop.permute.xlu0 %1551 }
 0x2c5   :  { %v1554_v5 = vunpack.i.h.bf16 %v1552_v53  ;;  %v1553_v54 = vunpack.i.l.bf16 %v1552_v53 }
 0x2c6   :  { %v880_v58 = vpop.permute.xlu1 %879 }
 0x2c7   :  { %v870_v48 = vsel %vm869_vm4, %v1553_v54, %v1554_v5 }
 0x2c8   :  { %v872_v56 = vmax.f32 %v862_v55, %v870_v48  ;;  %v897_v57 = vpop.permute.xlu0 %896 }
 0x2ca   :  { %v882_v59 = vmax.f32 %v872_v56, %v880_v58  ;;  %v899_v60 = vmax.f32 %v872_v56, %v897_v57 }
 0x2cc   :  { %v948_v61 = vpack.c.bf16 %v882_v59, %v882_v59  ;;  %v1236_v62 = vpack.c.bf16 %v899_v60, %v899_v60 }
 0x2ce   :  { %1241 = vrot.lane.b32.xlu0 %v1236_v62, %s1785_s13  ;;  %953 = vrot.lane.b32.xlu1 %v948_v61, %s1785_s13 }
 0x340   :  { %v1242_v0 = vpop.permute.xlu0 %1241  ;;  %v954_v1 = vpop.permute.xlu1 %953 }
 0x341   :  { %1483 = vmatmul.mubr.msk.bf16.vlgmr.msra.gmra.mrb[4].mxu0 %vm964_vm5, %v954_v1  ;;  %1511 = vmatmul.mubr.msk.bf16.vlgmr.msra.gmra.mrb[8].mxu1 %vm964_vm5, %v1242_v0 }
 0x342   :  { %1487 = vmatpush3.bf16.msra.mxu0 %v1719_v63  ;;  %1502 = vmatprep.mubr.msk.bf16.mxu0 %vm1786_vm1, %v1784_v23 }
 0x343   :  { %1488 = vmatprep.subr.bf16.mxu0 %v1784_v23 }
 0x346   :  { %1489 = vmatpush3.bf16.msra.mxu0 %v1720_v2 }
 0x347   :  { %1490 = vmatprep.subr.bf16.mxu0 %v1784_v23 }
 0x34a   :  { %1491 = vmatpush3.bf16.msra.mxu0 %v1721_v8 }
 0x34b   :  { %1492 = vmatprep.subr.bf16.mxu0 %v1784_v23 }
 0x34e   :  { %1493 = vmatpush3.bf16.msra.mxu0 %v1722_v10 }
 0x34f   :  { %1494 = vmatprep.subr.bf16.mxu0 %v1784_v23 }
 0x352   :  { %1495 = vmatpush3.bf16.msra.mxu0 %v1723_v11 }
 0x353   :  { %1496 = vmatprep.subr.bf16.mxu0 %v1784_v23 }
 0x356   :  { %1497 = vmatpush3.bf16.msra.mxu0 %v1724_v12 }
 0x357   :  { %1498 = vmatprep.subr.bf16.mxu0 %v1784_v23 }
 0x35a   :  { %1499 = vmatpush3.bf16.msra.mxu0 %v1725_v13 }
 0x35b   :  { %1500 = vmatprep.subr.bf16.mxu0 %v1784_v23 }
 0x35e   :  { %1501 = vmatpush3.bf16.msra.mxu0 %v1726_v14 }
 0x361   :  { %1503 = vmatmul.mubr.bf16.vlgmr.msra.gmra.mrb[8].mxu0 %v1871_v38 }
 0x414   :  { %v1006_v15 = vpop.f32.mrb[4].mxu0  ;;  %v1292_v16 = vpop.f32.mrb[8].mxu1 }
 0x415   :  { %v1191_v17 = vadd.f32 %v1462_v6, %v1006_v15  ;;  %v1484_v18 = vpop.f32.mrb[5].mxu0  ;;  %v1512_v19 = vpop.f32.mrb[9].mxu1 }
 0x416   :  { %v1009_v20 = vpop.f32.mrb[6].mxu0  ;;  %v1295_v21 = vpop.f32.mrb[10].mxu1 }
 0x417   :  { %v1485_v22 = vpop.f32.mrb[7].mxu0  ;;  %v1513_v24 = vpop.f32.mrb[11].mxu1 }
 0x434   :  { %v1230_v25 = vpop.f32.mrb[8].mxu0 }
 0x435   :  { %v1231_v26 = vadd.f32 %v1230_v25, %v1191_v17  ;;  %v1504_v27 = vpop.f32.mrb[9].mxu0 }
 0x436   :  { %v1233_v23 = vpop.f32.mrb[10].mxu0 }
 0x437   :  { %v1298_v29 = vadd.f32 %v1292_v16, %v1231_v26  ;;  %v1505_v30 = vpop.f32.mrb[11].mxu0 }
 0x439   :  { %v1306_v38 = vadd.f32 %v1440_v28, %v1298_v29 }
 0x43b   :  { %1307 = vst [vmem:[%s1943_s7] sm:$0xff] %v1306_v38 }
 0x43c   :  { %1312 = vsyncpa [#allocation3], 1 }
 0x43d   :  { %1313 = vsyncpa [#allocation5], 1 }

</bundles_post_ra>
